<compile_context>
chip_gen: v7x
topology: tpu7x:2x2x1
jax: 0.10.0
libtpu: 0.0.40
codegen_flags: <defaults>
</compile_context>

<pallas_src>
import functools
import math

import jax
import jax.numpy as jnp
from jax.experimental import pallas as pl
from jax.experimental.pallas import tpu as pltpu

LN_EPS = 1e-5  # nn.LayerNorm default
_LANE = 128
_SUBLANE = 8


def _round_up(x, m):
    return ((x + m - 1) // m) * m


def _cdiv(a, b):
    return (a + b - 1) // b


def _vmem_capacity_bytes():
    try:
        return int(pltpu.get_tpu_info().vmem_capacity_bytes)
    except Exception:
        return 128 * 1024 * 1024  # conservative default (v5e/v6e)


# ----------------------------------------------------------------------------
# Kernels
# ----------------------------------------------------------------------------
def _ln_epilogue(proj, bgb_f32, d_out, d_out_pad, out_dtype):
    """bias add + LayerNorm over the TRUE d_out features, affine folded."""
    bias = bgb_f32[0:1, :]
    gamma = bgb_f32[1:2, :]
    beta = bgb_f32[2:3, :]
    proj = proj + bias                                  # padded cols stay 0
    inv_n = jnp.float32(1.0 / d_out)
    mean = jnp.sum(proj, axis=-1, keepdims=True) * inv_n
    centered = proj - mean
    if d_out_pad != d_out:
        # Exclude the zero-padded lanes from the (two-pass) variance.
        col = jax.lax.broadcasted_iota(jnp.int32, proj.shape, 1)
        centered = jnp.where(col < d_out, centered, 0.0)
    var = jnp.sum(centered * centered, axis=-1, keepdims=True) * inv_n
    scale = gamma * jax.lax.rsqrt(var + LN_EPS)         # (tb, d_out_pad)
    # (proj - mean) * rstd * gamma + beta; padded cols -> 0 (gamma=beta=0).
    return (centered * scale + beta).astype(out_dtype)


def _kernel_single(x_ref, w_ref, bgb_ref, o_ref, *, d_out, d_out_pad):
    # Whole reduction in one MXU call; no accumulator scratch needed.
    proj = jnp.dot(x_ref[...], w_ref[...], preferred_element_type=jnp.float32)
    o_ref[...] = _ln_epilogue(proj, bgb_ref[...].astype(jnp.float32),
                              d_out, d_out_pad, o_ref.dtype)


def _kernel_multi(x_ref, w_ref, bgb_ref, o_ref, acc_ref, *, d_out, d_out_pad):
    k = pl.program_id(1)
    part = jnp.dot(x_ref[...], w_ref[...], preferred_element_type=jnp.float32)

    @pl.when(k == 0)
    def _():
        acc_ref[...] = part                 # direct assign: no zero-init pass

    @pl.when(k > 0)
    def _():
        acc_ref[...] += part

    @pl.when(k == pl.num_programs(1) - 1)
    def _():
        o_ref[...] = _ln_epilogue(acc_ref[...], bgb_ref[...].astype(jnp.float32),
                                  d_out, d_out_pad, o_ref.dtype)


# ----------------------------------------------------------------------------
# One-time parameter preparation (hoisted out of the per-call path)
# ----------------------------------------------------------------------------
def prepare_params(weight_t, bias, gamma, beta, *, tile_k_max=None):
    """Pads/packs the parameters once.

    weight_t: [input_dim, output_dim] (PyTorch weight.T)
    bias/gamma/beta: [output_dim]
    """
    d_in, d_out = weight_t.shape
    vmem_cap = _vmem_capacity_bytes()
    small_vmem = vmem_cap <= 64 * 1024 * 1024           # v7x-class TensorCore

    if tile_k_max is None:
        tile_k_max = 1024 if small_vmem else 2048

    d_out_pad = _round_up(d_out, _LANE)

    # K tiling: single step when D_in fits; otherwise prefer an aligned tk
    # that divides D_in (no K padding, no per-call weight copy).
    if d_in <= tile_k_max:
        tk = d_in
        k_pad = d_in
    else:
        tk = None
        t = (tile_k_max // _LANE) * _LANE
        while t >= _LANE:
            if d_in % t == 0:
                tk = t
                break
            t -= _LANE
        if tk is None:
            tk = (tile_k_max // _LANE) * _LANE
            k_pad = _round_up(d_in, tk)
        else:
            k_pad = d_in

    pad_k = k_pad - d_in
    pad_n = d_out_pad - d_out
    w = weight_t
    if pad_k or pad_n:
        w = jnp.pad(weight_t, ((0, pad_k), (0, pad_n)))
    bgb = jnp.stack([bias, gamma, beta], axis=0)        # (3, d_out)
    if pad_n:
        bgb = jnp.pad(bgb, ((0, 0), (0, pad_n)))

    return dict(weight=w, bgb=bgb, d_in=d_in, d_out=d_out,
                d_out_pad=d_out_pad, k_pad=k_pad, tk=tk, nk=k_pad // tk,
                vmem_cap=vmem_cap, small_vmem=small_vmem)


# ----------------------------------------------------------------------------
# Forward
# ----------------------------------------------------------------------------
def adapter_forward(x, params, *, tile_b=None):
    """Fused Linear + LayerNorm (+ identity dropout) forward.

    x: [B, input_dim] or [input_dim];  returns [B, output_dim] / [output_dim].
    """
    single_sample = x.ndim == 1
    if single_sample:
        x = x[None, :]
    B, d_in = x.shape
    assert d_in == params["d_in"], "input_dim mismatch with prepared params"

    d_out, d_out_pad = params["d_out"], params["d_out_pad"]
    k_pad, tk, nk = params["k_pad"], params["tk"], params["nk"]
    vmem_cap, small_vmem = params["vmem_cap"], params["small_vmem"]
    w, bgb = params["weight"], params["bgb"]

    # --- batch tiling ---
    B_pad = _round_up(B, _SUBLANE)
    if tile_b is None:
        # 128 MiB VMEM parts (v5e/v6e): bigger batch tiles -> fewer full
        # weight re-streams from HBM.  64 MiB parts (v7x): smaller tiles.
        tile_b = 256 if small_vmem else 512
    tb = min(tile_b, B_pad)
    if small_vmem and B_pad >= 16:
        # Guarantee >= 2 batch tiles so the "parallel" axis can shard across
        # v7x's two TensorCores.
        tb = min(tb, _round_up(_cdiv(B_pad, 2), _SUBLANE))

    # --- keep double-buffered tiles (+ accumulator) under the VMEM budget ---
    xb = jnp.dtype(x.dtype).itemsize
    wb = jnp.dtype(w.dtype).itemsize
    budget = int(0.7 * vmem_cap)

    def vmem_est(tb_):
        est = (2 * tb_ * tk * xb             # x tiles (double buffered)
               + 2 * tk * d_out_pad * wb     # weight tiles
               + 2 * tb_ * d_out_pad * xb    # output tiles
               + 2 * 8 * d_out_pad * 4)      # packed bias/gamma/beta
        if nk > 1:
            est += tb_ * d_out_pad * 4       # f32 accumulator scratch
        return est

    while vmem_est(tb) > budget and tb > _SUBLANE:
        tb = max(_SUBLANE, _round_up(tb // 2, _SUBLANE))

    B_pad = _round_up(B_pad, tb)
    grid = (B_pad // tb, nk)

    # --- per-call padding of the activation only (params were prepped once) ---
    pad_b = B_pad - B
    pad_k = k_pad - d_in
    if pad_b or pad_k:
        x = jnp.pad(x, ((0, pad_b), (0, pad_k)))

    est = vmem_est(tb)
    vmem_limit = min(int(0.85 * vmem_cap),
                     max(32 * 1024 * 1024, int(est * 1.5)))

    if nk == 1:
        kernel = functools.partial(_kernel_single, d_out=d_out, d_out_pad=d_out_pad)
        scratch = []
    else:
        kernel = functools.partial(_kernel_multi, d_out=d_out, d_out_pad=d_out_pad)
        scratch = [pltpu.VMEM((tb, d_out_pad), jnp.float32)]

    out = pl.pallas_call(
        kernel,
        out_shape=jax.ShapeDtypeStruct((B_pad, d_out_pad), x.dtype),
        grid_spec=pltpu.PrefetchScalarGridSpec(
            num_scalar_prefetch=0,
            grid=grid,
            in_specs=[
                pl.BlockSpec((tb, tk), lambda i, k: (i, k)),          # x
                pl.BlockSpec((tk, d_out_pad), lambda i, k: (k, 0)),   # weight
                pl.BlockSpec((3, d_out_pad), lambda i, k: (0, 0)),    # bias/gamma/beta
            ],
            out_specs=pl.BlockSpec((tb, d_out_pad), lambda i, k: (i, 0)),
            scratch_shapes=scratch,
        ),
        compiler_params=pltpu.CompilerParams(
            dimension_semantics=("parallel", "arbitrary"),
            vmem_limit_bytes=vmem_limit,
        ),
    )(x, w, bgb)

    out = out[:B, :d_out]
    if single_sample:
        out = out[0]
    return out


# ----------------------------------------------------------------------------
# Param init mirroring the PyTorch module (xavier_uniform_, zero bias, LN ones/zeros)
# ----------------------------------------------------------------------------
def init_params(key, input_dim, output_dim, dtype=jnp.float32):
    bound = math.sqrt(6.0 / (input_dim + output_dim))
    w = jax.random.uniform(key, (output_dim, input_dim), dtype=dtype,
                           minval=-bound, maxval=bound)
    weight_t = w.T                               # [input_dim, output_dim]
    bias = jnp.zeros((output_dim,), dtype=dtype)
    gamma = jnp.ones((output_dim,), dtype=dtype)
    beta = jnp.zeros((output_dim,), dtype=dtype)
    return weight_t, bias, gamma, beta


def _reference(x, weight_t, bias, gamma, beta):
    proj = x @ weight_t + bias
    mean = proj.mean(axis=-1, keepdims=True)
    var = ((proj - mean) ** 2).mean(axis=-1, keepdims=True)
    return (proj - mean) / jnp.sqrt(var + LN_EPS) * gamma + beta


if __name__ == "__main__":
    key = jax.random.PRNGKey(0)
    k1, k2, k3, k4, k5 = jax.random.split(key, 5)

    # --- Test 1: module-like (small) shapes: input_dim=784,
    #     25 nodes * 5 dims * 2 = 250 (exercises D_out lane padding 250->384) ---
    B, d_in, d_out = 8, 784, 25 * 5 * 2
    w_t, bias, gamma, beta = init_params(k1, d_in, d_out)
    bias = 0.01 * jax.random.normal(k2, (d_out,), dtype=jnp.float32)  # nonzero bias
    x = jax.random.normal(k3, (B, d_in), dtype=jnp.float32)

    params = prepare_params(w_t, bias, gamma, beta)
    y = jax.block_until_ready(adapter_forward(x, params))
    ref = _reference(x, w_t, bias, gamma, beta)
    assert y.shape == (B, d_out)
    assert jnp.allclose(y, ref, atol=1e-3, rtol=1e-3), \
        float(jnp.max(jnp.abs(y - ref)))

    # single-sample path ([input_dim] -> [output_dim])
    ys = jax.block_until_ready(adapter_forward(x[0], params))
    assert ys.shape == (d_out,)
    assert jnp.allclose(ys, ref[0], atol=1e-3, rtol=1e-3)

    # --- Test 2: multi-K-step reduction path (nk > 1), lane-aligned D_out ---
    B2, d_in2, d_out2 = 16, 512, 256
    w2, b2, g2, be2 = init_params(k4, d_in2, d_out2)
    x2 = jax.random.normal(k5, (B2, d_in2), dtype=jnp.float32)
    params2 = prepare_params(w2, b2, g2, be2, tile_k_max=256)  # force nk=2
    y2 = jax.block_until_ready(adapter_forward(x2, params2))
    ref2 = _reference(x2, w2, b2, g2, be2)
    assert y2.shape == (B2, d_out2)
    assert jnp.allclose(y2, ref2, atol=1e-3, rtol=1e-3), \
        float(jnp.max(jnp.abs(y2 - ref2)))

    # --- Test 3: native bf16 activations/params feed the MXU (f32 accumulate) ---
    params_bf = prepare_params(w_t.astype(jnp.bfloat16), bias.astype(jnp.bfloat16),
                               gamma.astype(jnp.bfloat16), beta.astype(jnp.bfloat16))
    y3 = jax.block_until_ready(adapter_forward(x.astype(jnp.bfloat16), params_bf))
    assert y3.shape == (B, d_out)
    assert bool(jnp.all(jnp.isfinite(y3.astype(jnp.float32))))

    print("KERNEL_OK")
</pallas_src>

<mosaic_0001>
module attributes {stable_mosaic.version = 11 : i64} {
  func.func @_kernel_single(%arg0: i32, %arg1: i32, %arg2: memref<8x784xf32, #tpu.memory_space<vmem>>, %arg3: memref<784x256xf32, #tpu.memory_space<vmem>>, %arg4: memref<3x256xf32, #tpu.memory_space<vmem>>, %arg5: memref<8x256xf32, #tpu.memory_space<vmem>>) attributes {dimension_semantics = [#tpu.dimension_semantics<parallel>, #tpu.dimension_semantics<arbitrary>], iteration_bounds = array<i64: 1, 1>, scalar_prefetch = 0 : i64, scratch_operands = 0 : i64, tpu.core_type = #tpu.core_type<tc>, window_params = [{transform_indices = @transform_0, window_bounds = array<i64: 8, 784>}, {transform_indices = @transform_1, window_bounds = array<i64: 784, 256>}, {pipeline_mode = #tpu.pipeline_mode<synchronous>, transform_indices = @transform_2, window_bounds = array<i64: 3, 256>}, {transform_indices = @transform_3, window_bounds = array<i64: 8, 256>}]} {
    %c0 = arith.constant 0 : index
    %c0_0 = arith.constant 0 : index
    %0 = vector.load %arg2[%c0, %c0_0] : memref<8x784xf32, #tpu.memory_space<vmem>>, vector<8x784xf32>
    %c0_1 = arith.constant 0 : index
    %c0_2 = arith.constant 0 : index
    %1 = vector.load %arg3[%c0_1, %c0_2] : memref<784x256xf32, #tpu.memory_space<vmem>>, vector<784x256xf32>
    %cst = arith.constant dense<0.000000e+00> : vector<8x256xf32>
    %2 = tpu.matmul %0, %1, %cst {dimension_numbers = #tpu.dot_dimension_numbers<[1], [0], [0], [1], [0, 0, 1, 1], [], []>} : vector<8x784xf32>, vector<784x256xf32>, vector<8x256xf32> -> vector<8x256xf32>
    %c0_3 = arith.constant 0 : index
    %c0_4 = arith.constant 0 : index
    %3 = vector.load %arg4[%c0_3, %c0_4] : memref<3x256xf32, #tpu.memory_space<vmem>>, vector<3x256xf32>
    %4 = vector.extract_strided_slice %3 {offsets = [0, 0], sizes = [1, 256], strides = [1, 1]} : vector<3x256xf32> to vector<1x256xf32>
    %5 = vector.extract_strided_slice %3 {offsets = [1, 0], sizes = [1, 256], strides = [1, 1]} : vector<3x256xf32> to vector<1x256xf32>
    %6 = vector.extract_strided_slice %3 {offsets = [2, 0], sizes = [1, 256], strides = [1, 1]} : vector<3x256xf32> to vector<1x256xf32>
    %7 = vector.broadcast %4 : vector<1x256xf32> to vector<8x256xf32>
    %8 = arith.addf %2, %7 : vector<8x256xf32>
    %cst_5 = arith.constant dense<0.000000e+00> : vector<8xf32>
    %9 = vector.multi_reduction <add>, %8, %cst_5 [1] : vector<8x256xf32> to vector<8xf32>
    %10 = vector.shape_cast %9 : vector<8xf32> to vector<8x1xf32>
    %cst_6 = arith.constant 4.000000e-03 : f32
    %11 = vector.broadcast %cst_6 : f32 to vector<8x1xf32>
    %12 = arith.mulf %10, %11 : vector<8x1xf32>
    %13 = vector.broadcast %12 : vector<8x1xf32> to vector<8x256xf32>
    %14 = arith.subf %8, %13 : vector<8x256xf32>
    %15 = tpu.iota {dimensions = array<i32: 1>} : vector<8x256xi32>
    %c250_i32 = arith.constant 250 : i32
    %16 = vector.broadcast %c250_i32 : i32 to vector<8x256xi32>
    %17 = arith.cmpi slt, %15, %16 : vector<8x256xi32>
    %cst_7 = arith.constant 0.000000e+00 : f32
    %18 = vector.broadcast %cst_7 : f32 to vector<8x256xf32>
    %19 = arith.select %17, %14, %18 : vector<8x256xi1>, vector<8x256xf32>
    %20 = arith.mulf %19, %19 : vector<8x256xf32>
    %cst_8 = arith.constant dense<0.000000e+00> : vector<8xf32>
    %21 = vector.multi_reduction <add>, %20, %cst_8 [1] : vector<8x256xf32> to vector<8xf32>
    %22 = vector.shape_cast %21 : vector<8xf32> to vector<8x1xf32>
    %cst_9 = arith.constant 4.000000e-03 : f32
    %23 = vector.broadcast %cst_9 : f32 to vector<8x1xf32>
    %24 = arith.mulf %22, %23 : vector<8x1xf32>
    %cst_10 = arith.constant 9.99999974E-6 : f32
    %25 = vector.broadcast %cst_10 : f32 to vector<8x1xf32>
    %26 = arith.addf %24, %25 : vector<8x1xf32>
    %27 = math.rsqrt %26 : vector<8x1xf32>
    %28 = vector.broadcast %5 : vector<1x256xf32> to vector<8x256xf32>
    %29 = vector.broadcast %27 : vector<8x1xf32> to vector<8x256xf32>
    %30 = arith.mulf %28, %29 : vector<8x256xf32>
    %31 = arith.mulf %19, %30 : vector<8x256xf32>
    %32 = vector.broadcast %6 : vector<1x256xf32> to vector<8x256xf32>
    %33 = arith.addf %31, %32 : vector<8x256xf32>
    %c0_11 = arith.constant 0 : index
    %c0_12 = arith.constant 0 : index
    %34 = vector.load %arg5[%c0_11, %c0_12] : memref<8x256xf32, #tpu.memory_space<vmem>>, vector<8x256xf32>
    tpu.vector_store %arg5[%c0_11, %c0_12], %33 {strides = array<i32>} : memref<8x256xf32, #tpu.memory_space<vmem>>, vector<8x256xf32>,
    return
  }
  func.func @transform_0(%arg0: i32, %arg1: i32) -> (i32, i32) {
    %c0_i32 = arith.constant 0 : i32
    return %arg0, %arg1 : i32, i32
  }
  func.func @transform_1(%arg0: i32, %arg1: i32) -> (i32, i32) {
    %c0_i32 = arith.constant 0 : i32
    %c0_i32_0 = arith.constant 0 : i32
    return %arg1, %c0_i32 : i32, i32
  }
  func.func @transform_2(%arg0: i32, %arg1: i32) -> (i32, i32) {
    %c0_i32 = arith.constant 0 : i32
    %c0_i32_0 = arith.constant 0 : i32
    %c0_i32_1 = arith.constant 0 : i32
    return %c0_i32, %c0_i32_0 : i32, i32
  }
  func.func @transform_3(%arg0: i32, %arg1: i32) -> (i32, i32) {
    %c0_i32 = arith.constant 0 : i32
    %c0_i32_0 = arith.constant 0 : i32
    return %arg0, %c0_i32 : i32, i32
  }
}

</mosaic_0001>

<bundles_post_ra>
// kernel: tpu_custom_call.1
= control target key start
LH: loop header
LB: loop body
LE: loop exit
PB: predicated region body
PF: predicated region fallthrough
CT: control target
= control target key end

     0   :  { %8 = vsyncpa [#allocation3], 0  ;;  %s1027_s0 = inlined_call_operand.hbm [shape: f32[8,784], index: 0, kind: input, shape index: {}]   ;;  %s1028_s1 = inlined_call_operand.hbm [shape: f32[784,256], index: 1, kind: input, shape index: {}]   ;;  %s1029_s2 = inlined_call_operand.hbm [shape: f32[3,256], index: 2, kind: input, shape index: {}]   ;;  %s1030_s3 = inlined_call_operand.hbm [shape: f32[8,256], index: 3, kind: output, shape index: {}]  }
   0x1   :  { %9 = vsyncpa [#allocation6], 0 }
   0x2   :  { %10 = vsyncpa [#allocation4], 0  ;;  %s952_s12 = smov [#allocation5]   ;;  %s858_s16 = scalar_lea.hbm %s1028_s1, 25088 }
   0x3   :  { %s26_s13 = sshll.u32 %s952_s12, 4  ;;  %p859_p0 = scmp.ne.s32.totalorder %s1028_s1, %s858_s16  ;;  %s27_s13 = int_to_ptr.vmem [resolvable:$true] %s26_s13 }
   0x4   :  { %p862_p1 = scmp.lt.u32.totalorder %s858_s16, %s1028_s1 }
   0x6   :  { %p864_p2 = pnand %p862_p1, %p859_p0 }
   0x8   :  { %867 = shalt.err (!%p864_p2)
}
   0x9   :  { %s868_s21 = scalar_lea.vmem %s27_s13, 25088  ;;  %p873_p4 = scmp.lt.s32.totalorder %s27_s13, %s27_s13 }
   0xa   :  { %p869_p3 = scmp.ne.s32.totalorder %s27_s13, %s868_s21  ;;  %p874_p5 = scmp.lt.s32.totalorder %s868_s21, %s868_s21 }
   0xc   :  { %p875_p6 = por %p874_p5, %p873_p4 }
   0xe   :  { %p876_p7 = pnand %p875_p6, %p869_p3 }
  0x10   :  { %879 = shalt.err (!%p876_p7)
}
  0x11   :  { %s953_s22 = smov 256   ;;  %s954_s23 = smov 16  }
  0x12   :  { %32 = dma.hbm_to_vmem [thread:$0]  %s1028_s1, 25088, %s27_s13, [#allocation6], %s953_s22, %s953_s22, %s954_s23  }
  0x13   :  { %s955_s26 = smov [#allocation2]   ;;  %s956_s28 = smov [#allocation7]  }
  0x14   :  { %s17_s27 = sshll.u32 %s955_s26, 4  ;;  %s39_s29 = sshll.u32 %s956_s28, 4  ;;  %s18_s27 = int_to_ptr.vmem [resolvable:$true] %s17_s27  ;;  %s40_s29 = int_to_ptr.vmem [resolvable:$true] %s39_s29 }
  0x15   :  { %s880_s5 = scalar_lea.hbm %s1027_s0, 896 }
  0x16   :  { %p881_p8 = scmp.ne.s32.totalorder %s1027_s0, %s880_s5  ;;  %p884_p9 = scmp.lt.u32.totalorder %s880_s5, %s1027_s0 }
  0x18   :  { %p886_p10 = pnand %p884_p9, %p881_p8 }
  0x1a   :  { %889 = shalt.err (!%p886_p10)
}
  0x1b   :  { %s890_s1 = scalar_lea.vmem %s18_s27, 896  ;;  %p895_p12 = scmp.lt.s32.totalorder %s18_s27, %s18_s27 }
  0x1c   :  { %p891_p11 = scmp.ne.s32.totalorder %s18_s27, %s890_s1  ;;  %p896_p13 = scmp.lt.s32.totalorder %s890_s1, %s890_s1 }
  0x1e   :  { %p897_p0 = por %p896_p13, %p895_p12 }
  0x20   :  { %p898_p1 = pnand %p897_p0, %p891_p11 }
  0x22   :  { %901 = shalt.err (!%p898_p1)
}
  0x23   :  { %20 = dma.hbm_to_vmem [thread:$0]  %s1027_s0, 896, %s18_s27, [#allocation3]  }
  0x24   :  { %s902_s14 = scalar_lea.hbm %s1029_s2, 128 }
  0x25   :  { %p903_p2 = scmp.ne.s32.totalorder %s1029_s2, %s902_s14  ;;  %p906_p3 = scmp.lt.u32.totalorder %s902_s14, %s1029_s2 }
  0x27   :  { %p908_p4 = pnand %p906_p3, %p903_p2 }
  0x29   :  { %911 = shalt.err (!%p908_p4)
}
  0x2a   :  { %s912_s19 = scalar_lea.vmem %s40_s29, 128  ;;  %p917_p6 = scmp.lt.s32.totalorder %s40_s29, %s40_s29 }
  0x2b   :  { %p913_p5 = scmp.ne.s32.totalorder %s40_s29, %s912_s19  ;;  %p918_p7 = scmp.lt.s32.totalorder %s912_s19, %s912_s19 }
  0x2d   :  { %p919_p8 = por %p918_p7, %p917_p6 }
  0x2f   :  { %p920_p9 = pnand %p919_p8, %p913_p5 }
  0x31   :  { %923 = shalt.err (!%p920_p9)
}
  0x32   :  { %42 = dma.hbm_to_vmem [thread:$0]  %s1029_s2, 128, %s40_s29, [#allocation6]  }
  0x33   :  { %946 = dma.done.wait [#allocation3], 896  }
  0x34   :  { %947 = vsyncadd [#allocation3], 4294966400 }
  0x35   :  { %948 = dma.done.wait [#allocation6], 25216  }
  0x36   :  { %949 = vsyncadd [#allocation6], 4294942080  ;;  %v60_v0 = vld [vmem:[#allocation5 + $0x8] sm:$0xff]  ;;  %v62_v1 = vld [vmem:[#allocation5 + $0x18] sm:$0xff]  ;;  %vm275_vm0 = vcmask 130048   ;;  %s958_s2 = smov [#allocation8]  }
  0x37   :  { %v59_v2 = vld [vmem:[#allocation5] sm:$0xff]  ;;  %v645_v3 = vpack.c.bf16 %v62_v1, %v60_v0  ;;  %v61_v4 = vld [vmem:[#allocation5 + $0x10] sm:$0xff]  ;;  %v64_v5 = vld [vmem:[#allocation5 + $0x28] sm:$0xff]  ;;  %s634_s21 = sshll.u32 %s958_s2, 4  ;;  %s635_s21 = int_to_ptr.vmem [resolvable:$true] %s634_s21 }
  0x38   :  { %v66_v6 = vld [vmem:[#allocation5 + $0x38] sm:$0xff]  ;;  %v647_v7 = vpack.c.bf16 %v61_v4, %v59_v2  ;;  %v63_v9 = vld [vmem:[#allocation5 + $0x20] sm:$0xff]  ;;  %v65_v10 = vld [vmem:[#allocation5 + $0x30] sm:$0xff]  ;;  %s924_s22 = scalar_lea.vmem %s635_s21, 256  ;;  %p929_p11 = scmp.lt.s32.totalorder %s635_s21, %s635_s21 }
  0x39   :  { %v649_v8 = vpack.c.bf16 %v66_v6, %v64_v5  ;;  %v68_v11 = vld [vmem:[#allocation5 + $0x48] sm:$0xff]  ;;  %646 = vmatprep.subr.bf16.mxu1 %v645_v3  ;;  %v70_v12 = vld [vmem:[#allocation5 + $0x58] sm:$0xff]  ;;  %v651_v13 = vpack.c.bf16 %v65_v10, %v63_v9  ;;  %v67_v15 = vld [vmem:[#allocation5 + $0x40] sm:$0xff]  ;;  %p925_p10 = scmp.ne.s32.totalorder %s635_s21, %s924_s22  ;;  %p930_p12 = scmp.lt.s32.totalorder %s924_s22, %s924_s22 }
  0x3a   :  { %648 = vmatpush1.bf16.msra.mxu1 %v647_v7  ;;  %v653_v14 = vpack.c.bf16 %v70_v12, %v68_v11  ;;  %v69_v16 = vld [vmem:[#allocation5 + $0x50] sm:$0xff]  ;;  %v72_v17 = vld [vmem:[#allocation5 + $0x68] sm:$0xff]  ;;  %v74_v18 = vld [vmem:[#allocation5 + $0x78] sm:$0xff] }
  0x3b   :  { %650 = vmatprep.subr.bf16.mxu1 %v649_v8  ;;  %v655_v19 = vpack.c.bf16 %v69_v16, %v67_v15  ;;  %v657_v20 = vpack.c.bf16 %v74_v18, %v72_v17  ;;  %v71_v21 = vld [vmem:[#allocation5 + $0x60] sm:$0xff]  ;;  %v73_v22 = vld [vmem:[#allocation5 + $0x70] sm:$0xff]  ;;  %v76_v23 = vld [vmem:[#allocation5 + $0x88] sm:$0xff]  ;;  %p931_p13 = por %p930_p12, %p929_p11 }
  0x3c   :  { %v78_v24 = vld [vmem:[#allocation5 + $0x98] sm:$0xff]  ;;  %v659_v25 = vpack.c.bf16 %v73_v22, %v71_v21  ;;  %v75_v27 = vld [vmem:[#allocation5 + $0x80] sm:$0xff]  ;;  %v77_v28 = vld [vmem:[#allocation5 + $0x90] sm:$0xff] }
  0x3d   :  { %v661_v26 = vpack.c.bf16 %v78_v24, %v76_v23  ;;  %v80_v29 = vld [vmem:[#allocation5 + $0xa8] sm:$0xff]  ;;  %v82_v30 = vld [vmem:[#allocation5 + $0xb8] sm:$0xff]  ;;  %v663_v31 = vpack.c.bf16 %v77_v28, %v75_v27  ;;  %v79_v32 = vld [vmem:[#allocation5 + $0xa0] sm:$0xff]  ;;  %p932_p0 = pnand %p931_p13, %p925_p10 }
  0x3e   :  { %652 = vmatpush1.bf16.msra.mxu1 %v651_v13  ;;  %v81_v33 = vld [vmem:[#allocation5 + $0xb0] sm:$0xff]  ;;  %v665_v34 = vpack.c.bf16 %v82_v30, %v80_v29  ;;  %v84_v35 = vld [vmem:[#allocation5 + $0xc8] sm:$0xff]  ;;  %v190_v37 = vld [vmem:[#allocation5 + $0x418] sm:$0xff] }
  0x3f   :  { %654 = vmatprep.subr.bf16.mxu1 %v653_v14  ;;  %v188_v36 = vld [vmem:[#allocation5 + $0x408] sm:$0xff]  ;;  %v86_v38 = vld [vmem:[#allocation5 + $0xd8] sm:$0xff]  ;;  %v187_v40 = vld [vmem:[#allocation5 + $0x400] sm:$0xff]  ;;  %v667_v43 = vpack.c.bf16 %v81_v33, %v79_v32 }
  0x40   :  { %v773_v39 = vpack.c.bf16 %v190_v37, %v188_v36  ;;  %v189_v41 = vld [vmem:[#allocation5 + $0x410] sm:$0xff]  ;;  %v192_v44 = vld [vmem:[#allocation5 + $0x428] sm:$0xff]  ;;  %v194_v45 = vld [vmem:[#allocation5 + $0x438] sm:$0xff]  ;;  %v669_v47 = vpack.c.bf16 %v86_v38, %v84_v35 }
  0x41   :  { %v775_v42 = vpack.c.bf16 %v189_v41, %v187_v40  ;;  %v191_v46 = vld [vmem:[#allocation5 + $0x420] sm:$0xff]  ;;  %v85_v49 = vld [vmem:[#allocation5 + $0xd0] sm:$0xff]  ;;  %v777_v50 = vpack.c.bf16 %v194_v45, %v192_v44  ;;  %v88_v52 = vld [vmem:[#allocation5 + $0xe8] sm:$0xff] }
  0x42   :  { %656 = vmatpush1.bf16.msra.mxu1 %v655_v19  ;;  %774 = vmatprep.subr.bf16.mxu0 %v773_v39  ;;  %v83_v48 = vld [vmem:[#allocation5 + $0xc0] sm:$0xff]  ;;  %v193_v51 = vld [vmem:[#allocation5 + $0x430] sm:$0xff]  ;;  %v90_v53 = vld [vmem:[#allocation5 + $0xf8] sm:$0xff] }
  0x43   :  { %658 = vmatprep.subr.bf16.mxu1 %v657_v20  ;;  %776 = vmatpush1.bf16.msra.mxu0 %v775_v42  ;;  %v779_v54 = vpack.c.bf16 %v193_v51, %v191_v46  ;;  %v196_v55 = vld [vmem:[#allocation5 + $0x448] sm:$0xff]  ;;  %v198_v56 = vld [vmem:[#allocation5 + $0x458] sm:$0xff]  ;;  %v195_v57 = vld [vmem:[#allocation5 + $0x440] sm:$0xff]  ;;  %v671_v59 = vpack.c.bf16 %v85_v49, %v83_v48  ;;  %v673_v0 = vpack.c.bf16 %v90_v53, %v88_v52 }
  0x44   :  { %778 = vmatprep.subr.bf16.mxu0 %v777_v50  ;;  %v197_v58 = vld [vmem:[#allocation5 + $0x450] sm:$0xff]  ;;  %v87_v60 = vld [vmem:[#allocation5 + $0xe0] sm:$0xff]  ;;  %v92_v62 = vld [vmem:[#allocation5 + $0x108] sm:$0xff]  ;;  %v781_v63 = vpack.c.bf16 %v198_v56, %v196_v55 }
  0x45   :  { %v89_v61 = vld [vmem:[#allocation5 + $0xf0] sm:$0xff]  ;;  %v94_v1 = vld [vmem:[#allocation5 + $0x118] sm:$0xff]  ;;  %v783_v2 = vpack.c.bf16 %v197_v58, %v195_v57  ;;  %v200_v3 = vld [vmem:[#allocation5 + $0x468] sm:$0xff] }
  0x46   :  { %660 = vmatpush1.bf16.msra.mxu1 %v659_v25  ;;  %v202_v4 = vld [vmem:[#allocation5 + $0x478] sm:$0xff]  ;;  %v199_v6 = vld [vmem:[#allocation5 + $0x460] sm:$0xff]  ;;  %v201_v7 = vld [vmem:[#allocation5 + $0x470] sm:$0xff]  ;;  %v675_v9 = vpack.c.bf16 %v89_v61, %v87_v60  ;;  %v677_v12 = vpack.c.bf16 %v94_v1, %v92_v62 }
  0x47   :  { %662 = vmatprep.subr.bf16.mxu1 %v661_v26  ;;  %780 = vmatpush1.bf16.msra.mxu0 %v779_v54  ;;  %v785_v5 = vpack.c.bf16 %v202_v4, %v200_v3  ;;  %v53_v8 = vld [vmem:[#allocation2 + $0x8] sm:$0xff]  ;;  %v91_v10 = vld [vmem:[#allocation5 + $0x100] sm:$0xff]  ;;  %v204_v11 = vld [vmem:[#allocation5 + $0x488] sm:$0xff]  ;;  %v787_v15 = vpack.c.bf16 %v201_v7, %v199_v6 }
  0x48   :  { %782 = vmatprep.subr.bf16.mxu0 %v781_v63  ;;  %343 = vmatprep.mubr.f32.mxu1 %v53_v8  ;;  %v93_v13 = vld [vmem:[#allocation5 + $0x110] sm:$0xff]  ;;  %v96_v14 = vld [vmem:[#allocation5 + $0x128] sm:$0xff]  ;;  %v206_v16 = vld [vmem:[#allocation5 + $0x498] sm:$0xff] }
  0x49   :  { %v98_v17 = vld [vmem:[#allocation5 + $0x138] sm:$0xff]  ;;  %v789_v18 = vpack.c.bf16 %v206_v16, %v204_v11  ;;  %v203_v19 = vld [vmem:[#allocation5 + $0x480] sm:$0xff]  ;;  %v205_v20 = vld [vmem:[#allocation5 + $0x490] sm:$0xff]  ;;  %v679_v23 = vpack.c.bf16 %v93_v13, %v91_v10 }
  0x4a   :  { %664 = vmatpush1.bf16.msra.mxu1 %v663_v31  ;;  %v208_v21 = vld [vmem:[#allocation5 + $0x4a8] sm:$0xff]  ;;  %v210_v22 = vld [vmem:[#allocation5 + $0x4b8] sm:$0xff]  ;;  %v681_v24 = vpack.c.bf16 %v98_v17, %v96_v14  ;;  %v95_v25 = vld [vmem:[#allocation5 + $0x120] sm:$0xff]  ;;  %v791_v28 = vpack.c.bf16 %v205_v20, %v203_v19 }
  0x4b   :  { %666 = vmatprep.subr.bf16.mxu1 %v665_v34  ;;  %784 = vmatpush1.bf16.msra.mxu0 %v783_v2  ;;  %v97_v26 = vld [vmem:[#allocation5 + $0x130] sm:$0xff]  ;;  %v100_v27 = vld [vmem:[#allocation5 + $0x148] sm:$0xff]  ;;  %v102_v29 = vld [vmem:[#allocation5 + $0x158] sm:$0xff]  ;;  %v793_v30 = vpack.c.bf16 %v210_v22, %v208_v21 }
  0x4c   :  { %786 = vmatprep.subr.bf16.mxu0 %v785_v5  ;;  %v207_v31 = vld [vmem:[#allocation5 + $0x4a0] sm:$0xff]  ;;  %v209_v32 = vld [vmem:[#allocation5 + $0x4b0] sm:$0xff]  ;;  %v212_v33 = vld [vmem:[#allocation5 + $0x4c8] sm:$0xff]  ;;  %v683_v35 = vpack.c.bf16 %v97_v26, %v95_v25  ;;  %v685_v36 = vpack.c.bf16 %v102_v29, %v100_v27 }
  0x4d   :  { %v214_v34 = vld [vmem:[#allocation5 + $0x4d8] sm:$0xff]  ;;  %v99_v37 = vld [vmem:[#allocation5 + $0x140] sm:$0xff]  ;;  %v101_v38 = vld [vmem:[#allocation5 + $0x150] sm:$0xff]  ;;  %v795_v40 = vpack.c.bf16 %v209_v32, %v207_v31 }
  0x4e   :  { %668 = vmatpush1.bf16.msra.mxu1 %v667_v43  ;;  %v104_v39 = vld [vmem:[#allocation5 + $0x168] sm:$0xff]  ;;  %v106_v41 = vld [vmem:[#allocation5 + $0x178] sm:$0xff]  ;;  %v797_v42 = vpack.c.bf16 %v214_v34, %v212_v33  ;;  %v211_v43 = vld [vmem:[#allocation5 + $0x4c0] sm:$0xff] }
  0x4f   :  { %670 = vmatprep.subr.bf16.mxu1 %v669_v47  ;;  %788 = vmatpush1.bf16.msra.mxu0 %v787_v15  ;;  %v213_v44 = vld [vmem:[#allocation5 + $0x4d0] sm:$0xff]  ;;  %v216_v45 = vld [vmem:[#allocation5 + $0x4e8] sm:$0xff]  ;;  %v218_v46 = vld [vmem:[#allocation5 + $0x4f8] sm:$0xff]  ;;  %v687_v47 = vpack.c.bf16 %v101_v38, %v99_v37  ;;  %v689_v48 = vpack.c.bf16 %v106_v41, %v104_v39 }
  0x50   :  { %790 = vmatprep.subr.bf16.mxu0 %v789_v18  ;;  %v103_v49 = vld [vmem:[#allocation5 + $0x160] sm:$0xff]  ;;  %v105_v50 = vld [vmem:[#allocation5 + $0x170] sm:$0xff]  ;;  %v108_v51 = vld [vmem:[#allocation5 + $0x188] sm:$0xff]  ;;  %v799_v52 = vpack.c.bf16 %v213_v44, %v211_v43  ;;  %v801_v54 = vpack.c.bf16 %v218_v46, %v216_v45 }
  0x51   :  { %v110_v53 = vld [vmem:[#allocation5 + $0x198] sm:$0xff]  ;;  %v215_v55 = vld [vmem:[#allocation5 + $0x4e0] sm:$0xff]  ;;  %v217_v56 = vld [vmem:[#allocation5 + $0x4f0] sm:$0xff] }
  0x52   :  { %672 = vmatpush1.bf16.msra.mxu1 %v671_v59  ;;  %v220_v57 = vld [vmem:[#allocation5 + $0x508] sm:$0xff]  ;;  %v222_v58 = vld [vmem:[#allocation5 + $0x518] sm:$0xff]  ;;  %v691_v59 = vpack.c.bf16 %v105_v50, %v103_v49  ;;  %v693_v60 = vpack.c.bf16 %v110_v53, %v108_v51  ;;  %v107_v61 = vld [vmem:[#allocation5 + $0x180] sm:$0xff] }
  0x53   :  { %674 = vmatprep.subr.bf16.mxu1 %v673_v0  ;;  %792 = vmatpush1.bf16.msra.mxu0 %v791_v28  ;;  %v109_v62 = vld [vmem:[#allocation5 + $0x190] sm:$0xff]  ;;  %v112_v63 = vld [vmem:[#allocation5 + $0x1a8] sm:$0xff]  ;;  %v803_v0 = vpack.c.bf16 %v217_v56, %v215_v55  ;;  %v114_v1 = vld [vmem:[#allocation5 + $0x1b8] sm:$0xff]  ;;  %v805_v2 = vpack.c.bf16 %v222_v58, %v220_v57 }
  0x54   :  { %794 = vmatprep.subr.bf16.mxu0 %v793_v30  ;;  %v219_v3 = vld [vmem:[#allocation5 + $0x500] sm:$0xff]  ;;  %v221_v4 = vld [vmem:[#allocation5 + $0x510] sm:$0xff]  ;;  %v224_v5 = vld [vmem:[#allocation5 + $0x528] sm:$0xff]  ;;  %v695_v7 = vpack.c.bf16 %v109_v62, %v107_v61  ;;  %v697_v8 = vpack.c.bf16 %v114_v1, %v112_v63 }
  0x55   :  { %v226_v6 = vld [vmem:[#allocation5 + $0x538] sm:$0xff]  ;;  %v113_v10 = vld [vmem:[#allocation5 + $0x1b0] sm:$0xff]  ;;  %v116_v11 = vld [vmem:[#allocation5 + $0x1c8] sm:$0xff] }
  0x56   :  { %676 = vmatpush1.bf16.msra.mxu1 %v675_v9  ;;  %v111_v9 = vld [vmem:[#allocation5 + $0x1a0] sm:$0xff]  ;;  %v118_v13 = vld [vmem:[#allocation5 + $0x1d8] sm:$0xff]  ;;  %v809_v14 = vpack.c.bf16 %v226_v6, %v224_v5  ;;  %v225_v16 = vld [vmem:[#allocation5 + $0x530] sm:$0xff] }
  0x57   :  { %678 = vmatprep.subr.bf16.mxu1 %v677_v12  ;;  %796 = vmatpush1.bf16.msra.mxu0 %v795_v40  ;;  %v807_v12 = vpack.c.bf16 %v221_v4, %v219_v3  ;;  %v223_v15 = vld [vmem:[#allocation5 + $0x520] sm:$0xff]  ;;  %v228_v17 = vld [vmem:[#allocation5 + $0x548] sm:$0xff]  ;;  %v230_v18 = vld [vmem:[#allocation5 + $0x558] sm:$0xff]  ;;  %v699_v19 = vpack.c.bf16 %v113_v10, %v111_v9  ;;  %v701_v20 = vpack.c.bf16 %v118_v13, %v116_v11 }
  0x58   :  { %798 = vmatprep.subr.bf16.mxu0 %v797_v42  ;;  %v115_v21 = vld [vmem:[#allocation5 + $0x1c0] sm:$0xff]  ;;  %v117_v22 = vld [vmem:[#allocation5 + $0x1d0] sm:$0xff]  ;;  %v122_v25 = vld [vmem:[#allocation5 + $0x1f8] sm:$0xff]  ;;  %v813_v26 = vpack.c.bf16 %v230_v18, %v228_v17 }
  0x59   :  { %v227_v27 = vld [vmem:[#allocation5 + $0x540] sm:$0xff]  ;;  %v229_v28 = vld [vmem:[#allocation5 + $0x550] sm:$0xff]  ;;  %v232_v29 = vld [vmem:[#allocation5 + $0x568] sm:$0xff]  ;;  %v703_v31 = vpack.c.bf16 %v117_v22, %v115_v21 }
  0x5a   :  { %680 = vmatpush1.bf16.msra.mxu1 %v679_v23  ;;  %v120_v23 = vld [vmem:[#allocation5 + $0x1e8] sm:$0xff]  ;;  %v234_v30 = vld [vmem:[#allocation5 + $0x578] sm:$0xff]  ;;  %v119_v33 = vld [vmem:[#allocation5 + $0x1e0] sm:$0xff] }
  0x5b   :  { %682 = vmatprep.subr.bf16.mxu1 %v681_v24  ;;  %800 = vmatpush1.bf16.msra.mxu0 %v799_v52  ;;  %v811_v24 = vpack.c.bf16 %v225_v16, %v223_v15  ;;  %v705_v32 = vpack.c.bf16 %v122_v25, %v120_v23  ;;  %v121_v34 = vld [vmem:[#allocation5 + $0x1f0] sm:$0xff]  ;;  %v126_v37 = vld [vmem:[#allocation5 + $0x218] sm:$0xff]  ;;  %v817_v38 = vpack.c.bf16 %v234_v30, %v232_v29  ;;  %v231_v39 = vld [vmem:[#allocation5 + $0x560] sm:$0xff] }
  0x5c   :  { %802 = vmatprep.subr.bf16.mxu0 %v801_v54  ;;  %v233_v40 = vld [vmem:[#allocation5 + $0x570] sm:$0xff]  ;;  %v236_v41 = vld [vmem:[#allocation5 + $0x588] sm:$0xff]  ;;  %v238_v42 = vld [vmem:[#allocation5 + $0x598] sm:$0xff]  ;;  %v707_v43 = vpack.c.bf16 %v121_v34, %v119_v33 }
  0x5d   :  { %v57_v44 = vld [vmem:[#allocation2 + $0x28] sm:$0xff]  ;;  %v123_v46 = vld [vmem:[#allocation5 + $0x200] sm:$0xff]  ;;  %v819_v49 = vpack.c.bf16 %v233_v40, %v231_v39  ;;  %v130_v50 = vld [vmem:[#allocation5 + $0x238] sm:$0xff]  ;;  %v821_v51 = vpack.c.bf16 %v238_v42, %v236_v41 }
  0x5e   :  { %684 = vmatpush1.bf16.msra.mxu1 %v683_v35  ;;  %v124_v35 = vld [vmem:[#allocation5 + $0x208] sm:$0xff]  ;;  %v235_v52 = vld [vmem:[#allocation5 + $0x580] sm:$0xff]  ;;  %v237_v53 = vld [vmem:[#allocation5 + $0x590] sm:$0xff]  ;;  %485 = vmatprep.mubr.f32.mxu0 %v57_v44 }
  0x5f   :  { %686 = vmatprep.subr.bf16.mxu1 %v685_v36  ;;  %804 = vmatpush1.bf16.msra.mxu0 %v803_v0  ;;  %v815_v36 = vpack.c.bf16 %v229_v28, %v227_v27  ;;  %v709_v45 = vpack.c.bf16 %v126_v37, %v124_v35  ;;  %v240_v54 = vld [vmem:[#allocation5 + $0x5a8] sm:$0xff]  ;;  %v242_v55 = vld [vmem:[#allocation5 + $0x5b8] sm:$0xff]  ;;  %v823_v62 = vpack.c.bf16 %v237_v53, %v235_v52  ;;  %v239_v1 = vld [vmem:[#allocation5 + $0x5a0] sm:$0xff] }
  0x60   :  { %806 = vmatprep.subr.bf16.mxu0 %v805_v2  ;;  %v52_v56 = vld [vmem:[#allocation2] sm:$0xff]  ;;  %v134_v63 = vld [vmem:[#allocation5 + $0x258] sm:$0xff]  ;;  %v825_v0 = vpack.c.bf16 %v242_v55, %v240_v54  ;;  %v241_v2 = vld [vmem:[#allocation5 + $0x5b0] sm:$0xff]  ;;  %v957_v54 = vmov 0.0  }
  0x61   :  { %v132_v61 = vld [vmem:[#allocation5 + $0x248] sm:$0xff]  ;;  %v246_v4 = vld [vmem:[#allocation5 + $0x5d8] sm:$0xff]  ;;  %v55_v5 = vld [vmem:[#allocation2 + $0x18] sm:$0xff]  ;;  %v827_v11 = vpack.c.bf16 %v241_v2, %v239_v1 }
  0x62   :  { %688 = vmatpush1.bf16.msra.mxu1 %v687_v47  ;;  %v125_v47 = vld [vmem:[#allocation5 + $0x210] sm:$0xff]  ;;  %v244_v3 = vld [vmem:[#allocation5 + $0x5c8] sm:$0xff]  ;;  %v250_v17 = vld [vmem:[#allocation5 + $0x5f8] sm:$0xff] }
  0x63   :  { %690 = vmatprep.subr.bf16.mxu1 %v689_v48  ;;  %808 = vmatpush1.bf16.msra.mxu0 %v807_v12  ;;  %v128_v48 = vld [vmem:[#allocation5 + $0x228] sm:$0xff]  ;;  %v711_v57 = vpack.c.bf16 %v125_v47, %v123_v46  ;;  %v133_v9 = vld [vmem:[#allocation5 + $0x250] sm:$0xff]  ;;  %v138_v12 = vld [vmem:[#allocation5 + $0x278] sm:$0xff]  ;;  %v829_v13 = vpack.c.bf16 %v246_v4, %v244_v3 }
  0x64   :  { %810 = vmatprep.subr.bf16.mxu0 %v809_v14  ;;  %v713_v58 = vpack.c.bf16 %v130_v50, %v128_v48  ;;  %v136_v10 = vld [vmem:[#allocation5 + $0x268] sm:$0xff]  ;;  %v243_v14 = vld [vmem:[#allocation5 + $0x5c0] sm:$0xff]  ;;  %v245_v15 = vld [vmem:[#allocation5 + $0x5d0] sm:$0xff] }
  0x65   :  { %v248_v16 = vld [vmem:[#allocation5 + $0x5e8] sm:$0xff]  ;;  %v137_v21 = vld [vmem:[#allocation5 + $0x270] sm:$0xff]  ;;  %v831_v23 = vpack.c.bf16 %v245_v15, %v243_v14  ;;  %v254_v29 = vld [vmem:[#allocation5 + $0x618] sm:$0xff] }
  0x66   :  { %692 = vmatpush1.bf16.msra.mxu1 %v691_v59  ;;  %v127_v59 = vld [vmem:[#allocation5 + $0x220] sm:$0xff]  ;;  %v140_v22 = vld [vmem:[#allocation5 + $0x288] sm:$0xff]  ;;  %v833_v25 = vpack.c.bf16 %v250_v17, %v248_v16  ;;  %v249_v27 = vld [vmem:[#allocation5 + $0x5f0] sm:$0xff] }
  0x67   :  { %694 = vmatprep.subr.bf16.mxu1 %v693_v60  ;;  %812 = vmatpush1.bf16.msra.mxu0 %v811_v24  ;;  %v129_v60 = vld [vmem:[#allocation5 + $0x230] sm:$0xff]  ;;  %v142_v24 = vld [vmem:[#allocation5 + $0x298] sm:$0xff]  ;;  %v252_v28 = vld [vmem:[#allocation5 + $0x608] sm:$0xff] }
  0x68   :  { %814 = vmatprep.subr.bf16.mxu0 %v813_v26  ;;  %v715_v6 = vpack.c.bf16 %v129_v60, %v127_v59  ;;  %v247_v26 = vld [vmem:[#allocation5 + $0x5e0] sm:$0xff]  ;;  %v141_v33 = vld [vmem:[#allocation5 + $0x290] sm:$0xff]  ;;  %v144_v34 = vld [vmem:[#allocation5 + $0x2a8] sm:$0xff]  ;;  %v837_v37 = vpack.c.bf16 %v254_v29, %v252_v28 }
  0x69   :  { %v835_v35 = vpack.c.bf16 %v249_v27, %v247_v26  ;;  %v253_v39 = vld [vmem:[#allocation5 + $0x610] sm:$0xff]  ;;  %v143_v42 = vld [vmem:[#allocation5 + $0x2a0] sm:$0xff]  ;;  %v56_v44 = vld [vmem:[#allocation2 + $0x20] sm:$0xff] }
  0x6a   :  { %696 = vmatpush1.bf16.msra.mxu1 %v695_v7  ;;  %v717_v7 = vpack.c.bf16 %v134_v63, %v132_v61  ;;  %v148_v46 = vld [vmem:[#allocation5 + $0x2c8] sm:$0xff]  ;;  %v150_v47 = vld [vmem:[#allocation5 + $0x2d8] sm:$0xff]  ;;  %v147_v50 = vld [vmem:[#allocation5 + $0x2c0] sm:$0xff] }
  0x6b   :  { %698 = vmatprep.subr.bf16.mxu1 %v697_v8  ;;  %816 = vmatpush1.bf16.msra.mxu0 %v815_v36  ;;  %v131_v8 = vld [vmem:[#allocation5 + $0x240] sm:$0xff]  ;;  %v146_v36 = vld [vmem:[#allocation5 + $0x2b8] sm:$0xff]  ;;  %v152_v52 = vld [vmem:[#allocation5 + $0x2e8] sm:$0xff] }
  0x6c   :  { %818 = vmatprep.subr.bf16.mxu0 %v817_v38  ;;  %v719_v18 = vpack.c.bf16 %v133_v9, %v131_v8  ;;  %v251_v38 = vld [vmem:[#allocation5 + $0x600] sm:$0xff]  ;;  %v729_v41 = vpack.c.bf16 %v146_v36, %v144_v34  ;;  %v154_v53 = vld [vmem:[#allocation5 + $0x2f8] sm:$0xff]  ;;  %v156_v60 = vld [vmem:[#allocation5 + $0x308] sm:$0xff] }
  0x6d   :  { %v58_v59 = vld [vmem:[#allocation2 + $0x30] sm:$0xff]  ;;  %v157_v1 = vld [vmem:[#allocation5 + $0x310] sm:$0xff]  ;;  %v160_v2 = vld [vmem:[#allocation5 + $0x328] sm:$0xff] }
  0x6e   :  { %700 = vmatpush1.bf16.msra.mxu1 %v699_v19  ;;  %v721_v19 = vpack.c.bf16 %v138_v12, %v136_v10  ;;  %v158_v61 = vld [vmem:[#allocation5 + $0x318] sm:$0xff]  ;;  %v164_v8 = vld [vmem:[#allocation5 + $0x348] sm:$0xff]  ;;  %v163_v12 = vld [vmem:[#allocation5 + $0x340] sm:$0xff] }
  0x6f   :  { %702 = vmatprep.subr.bf16.mxu1 %v701_v20  ;;  %820 = vmatpush1.bf16.msra.mxu0 %v819_v49  ;;  %v135_v20 = vld [vmem:[#allocation5 + $0x260] sm:$0xff]  ;;  %v733_v49 = vpack.c.bf16 %v150_v47, %v148_v46  ;;  %v741_v63 = vpack.c.bf16 %v158_v61, %v156_v60  ;;  %v162_v3 = vld [vmem:[#allocation5 + $0x338] sm:$0xff]  ;;  %v168_v14 = vld [vmem:[#allocation5 + $0x368] sm:$0xff] }
  0x70   :  { %822 = vmatprep.subr.bf16.mxu0 %v821_v51  ;;  %v723_v30 = vpack.c.bf16 %v137_v21, %v135_v20  ;;  %v149_v51 = vld [vmem:[#allocation5 + $0x2d0] sm:$0xff]  ;;  %v166_v9 = vld [vmem:[#allocation5 + $0x358] sm:$0xff]  ;;  %v172_v20 = vld [vmem:[#allocation5 + $0x388] sm:$0xff] }
  0x71   :  { %v735_v55 = vpack.c.bf16 %v149_v51, %v147_v50  ;;  %v170_v15 = vld [vmem:[#allocation5 + $0x378] sm:$0xff]  ;;  %v176_v26 = vld [vmem:[#allocation5 + $0x3a8] sm:$0xff]  ;;  %v179_v36 = vld [vmem:[#allocation5 + $0x3c0] sm:$0xff] }
  0x72   :  { %704 = vmatpush1.bf16.msra.mxu1 %v703_v31  ;;  %v725_v31 = vpack.c.bf16 %v142_v24, %v140_v22  ;;  %v753_v17 = vpack.c.bf16 %v170_v15, %v168_v14  ;;  %v174_v21 = vld [vmem:[#allocation5 + $0x398] sm:$0xff]  ;;  %v171_v24 = vld [vmem:[#allocation5 + $0x380] sm:$0xff] }
  0x73   :  { %706 = vmatprep.subr.bf16.mxu1 %v705_v32  ;;  %824 = vmatpush1.bf16.msra.mxu0 %v823_v62  ;;  %v139_v32 = vld [vmem:[#allocation5 + $0x280] sm:$0xff]  ;;  %v178_v27 = vld [vmem:[#allocation5 + $0x3b8] sm:$0xff] }
  0x74   :  { %826 = vmatprep.subr.bf16.mxu0 %v825_v0  ;;  %v727_v40 = vpack.c.bf16 %v141_v33, %v139_v32  ;;  %v155_v0 = vld [vmem:[#allocation5 + $0x300] sm:$0xff]  ;;  %v761_v29 = vpack.c.bf16 %v178_v27, %v176_v26  ;;  %v180_v32 = vld [vmem:[#allocation5 + $0x3c8] sm:$0xff]  ;;  %v182_v33 = vld [vmem:[#allocation5 + $0x3d8] sm:$0xff] }
  0x75   :  { %v743_v4 = vpack.c.bf16 %v157_v1, %v155_v0  ;;  %v255_v51 = vld [vmem:[#allocation7] sm:$0x77] }
  0x76   :  { %708 = vmatpush1.bf16.msra.mxu1 %v707_v43  ;;  %v145_v43 = vld [vmem:[#allocation5 + $0x2b0] sm:$0xff] }
  0x77   :  { %710 = vmatprep.subr.bf16.mxu1 %v709_v45  ;;  %828 = vmatpush1.bf16.msra.mxu0 %v827_v11  ;;  %v839_v45 = vpack.c.bf16 %v253_v39, %v251_v38  ;;  %v731_v48 = vpack.c.bf16 %v145_v43, %v143_v42  ;;  %v749_v11 = vpack.c.bf16 %v166_v9, %v164_v8  ;;  %v184_v38 = vld [vmem:[#allocation5 + $0x3e8] sm:$0xff]  ;;  %v186_v39 = vld [vmem:[#allocation5 + $0x3f8] sm:$0xff]  ;;  %v183_v42 = vld [vmem:[#allocation5 + $0x3e0] sm:$0xff] }
  0x78   :  { %830 = vmatprep.subr.bf16.mxu0 %v829_v13  ;;  %v165_v13 = vld [vmem:[#allocation5 + $0x350] sm:$0xff] }
  0x79   :  { %344 = vmatmul.mubr.f32.vlgmr.msra.gmra.mrb[0].mxu1 %v52_v56  ;;  %v737_v56 = vpack.c.bf16 %v154_v53, %v152_v52  ;;  %v751_v16 = vpack.c.bf16 %v165_v13, %v163_v12  ;;  %v185_v43 = vld [vmem:[#allocation5 + $0x3f0] sm:$0xff] }
  0x7a   :  { %712 = vmatpush1.bf16.msra.mxu1 %v711_v57  ;;  %414 = vmatprep.mubr.f32.mxu1 %v55_v5  ;;  %v151_v57 = vld [vmem:[#allocation5 + $0x2e0] sm:$0xff]  ;;  %v745_v5 = vpack.c.bf16 %v162_v3, %v160_v2 }
  0x7b   :  { %714 = vmatprep.subr.bf16.mxu1 %v713_v58  ;;  %832 = vmatpush1.bf16.msra.mxu0 %v831_v23  ;;  %v153_v58 = vld [vmem:[#allocation5 + $0x2f0] sm:$0xff]  ;;  %v757_v23 = vpack.c.bf16 %v174_v21, %v172_v20 }
  0x7c   :  { %834 = vmatprep.subr.bf16.mxu0 %v833_v25  ;;  %v739_v62 = vpack.c.bf16 %v153_v58, %v151_v57  ;;  %v173_v25 = vld [vmem:[#allocation5 + $0x390] sm:$0xff] }
  0x7d   :  { %v759_v28 = vpack.c.bf16 %v173_v25, %v171_v24 }
  0x7e   :  { %716 = vmatpush1.bf16.msra.mxu1 %v715_v6  ;;  %v159_v6 = vld [vmem:[#allocation5 + $0x320] sm:$0xff] }
  0x7f   :  { %718 = vmatprep.subr.bf16.mxu1 %v717_v7  ;;  %836 = vmatpush1.bf16.msra.mxu0 %v835_v35  ;;  %v161_v7 = vld [vmem:[#allocation5 + $0x330] sm:$0xff]  ;;  %v765_v35 = vpack.c.bf16 %v182_v33, %v180_v32 }
  0x80   :  { %838 = vmatprep.subr.bf16.mxu0 %v837_v37  ;;  %v747_v10 = vpack.c.bf16 %v161_v7, %v159_v6  ;;  %v181_v37 = vld [vmem:[#allocation5 + $0x3d0] sm:$0xff] }
  0x82   :  { %720 = vmatpush1.bf16.msra.mxu1 %v719_v18  ;;  %486 = vmatmul.mubr.f32.vlgmr.msra.gmra.mrb[0].mxu0 %v56_v44  ;;  %v167_v18 = vld [vmem:[#allocation5 + $0x360] sm:$0xff]  ;;  %v771_v44 = vpack.c.bf16 %v185_v43, %v183_v42 }
  0x83   :  { %722 = vmatprep.subr.bf16.mxu1 %v721_v19  ;;  %840 = vmatpush1.bf16.msra.mxu0 %v839_v45  ;;  %v169_v19 = vld [vmem:[#allocation5 + $0x370] sm:$0xff]  ;;  %v54_v45 = vld [vmem:[#allocation2 + $0x10] sm:$0xff] }
  0x84   :  { %556 = vmatprep.mubr.f32.mxu0 %v957_v54  ;;  %v755_v22 = vpack.c.bf16 %v169_v19, %v167_v18 }
  0x86   :  { %724 = vmatpush1.bf16.msra.mxu1 %v723_v30  ;;  %v175_v30 = vld [vmem:[#allocation5 + $0x3a0] sm:$0xff] }
  0x87   :  { %726 = vmatprep.subr.bf16.mxu1 %v725_v31  ;;  %v177_v31 = vld [vmem:[#allocation5 + $0x3b0] sm:$0xff] }
  0x88   :  { %v763_v34 = vpack.c.bf16 %v177_v31, %v175_v30 }
  0x8a   :  { %728 = vmatpush1.bf16.msra.mxu1 %v727_v40  ;;  %644 = vmatmul.mubr.msk.f32.vlgmr.msra.gmra.mrb[0].mxu0 %vm275_vm0, %v58_v59  ;;  %v767_v40 = vpack.c.bf16 %v181_v37, %v179_v36 }
  0x8b   :  { %730 = vmatprep.subr.bf16.mxu1 %v729_v41  ;;  %v769_v41 = vpack.c.bf16 %v186_v39, %v184_v38 }
  0x8e   :  { %732 = vmatpush1.bf16.msra.mxu1 %v731_v48  ;;  %v257_v48 = vlaneseq }
  0x8f   :  { %734 = vmatprep.subr.bf16.mxu1 %v733_v49 }
  0x90   :  { %v258_v49 = vshrl.u32 %v257_v48, 7  ;;  %v570_v0 = vand.u32 127, %v257_v48 }
  0x92   :  { %736 = vmatpush1.bf16.msra.mxu1 %v735_v55  ;;  %v259_v50 = vsub.s32 0, %v258_v49  ;;  %v263_v52 = vsub.s32 4, %v258_v49  ;;  %v571_v1 = vadd.s32 128, %v570_v0  ;;  %v586_v13 = vsub.s32 1, %v258_v49 }
  0x93   :  { %738 = vmatprep.subr.bf16.mxu1 %v737_v56  ;;  %v590_v14 = vsub.s32 5, %v258_v49  ;;  %v612_v18 = vsub.s32 6, %v258_v49 }
  0x94   :  { %v260_v53 = vrot.slane %v255_v51, %v259_v50  ;;  %v264_v54 = vrot.slane %v255_v51, %v263_v52  ;;  %vm573_vm1 = vcmp.lt.s32.totalorder %v571_v1, 250  ;;  %v587_v15 = vrot.slane %v255_v51, %v586_v13 }
  0x96   :  { %740 = vmatpush1.bf16.msra.mxu1 %v739_v62  ;;  %v270_v55 = vrot.slane %v260_v53, %v259_v50  ;;  %v274_v56 = vrot.slane %v264_v54, %v259_v50  ;;  %v597_v19 = vrot.slane %v587_v15, %v586_v13 }
  0x97   :  { %742 = vmatprep.subr.bf16.mxu1 %v741_v63 }
  0x9a   :  { %744 = vmatpush1.bf16.msra.mxu1 %v743_v4 }
  0x9b   :  { %746 = vmatprep.subr.bf16.mxu1 %v745_v5 }
  0x9e   :  { %748 = vmatpush1.bf16.msra.mxu1 %v747_v10 }
  0x9f   :  { %750 = vmatprep.subr.bf16.mxu1 %v749_v11 }
  0xa2   :  { %752 = vmatpush1.bf16.msra.mxu1 %v751_v16  ;;  %v591_v16 = vrot.slane %v255_v51, %v590_v14 }
  0xa3   :  { %754 = vmatprep.subr.bf16.mxu1 %v753_v17  ;;  %v608_v17 = vsub.s32 2, %v258_v49 }
  0xa4   :  { %v601_v20 = vrot.slane %v591_v16, %v586_v13 }
  0xa5   :  { %v609_v21 = vrot.slane %v255_v51, %v608_v17 }
  0xa6   :  { %756 = vmatpush1.bf16.msra.mxu1 %v755_v22  ;;  %v613_v22 = vrot.slane %v255_v51, %v612_v18 }
  0xa7   :  { %758 = vmatprep.subr.bf16.mxu1 %v757_v23  ;;  %v619_v26 = vrot.slane %v609_v21, %v608_v17 }
  0xa8   :  { %v623_v27 = vrot.slane %v613_v22, %v608_v17 }
  0xaa   :  { %760 = vmatpush1.bf16.msra.mxu1 %v759_v28 }
  0xab   :  { %762 = vmatprep.subr.bf16.mxu1 %v761_v29 }
  0xae   :  { %764 = vmatpush1.bf16.msra.mxu1 %v763_v34 }
  0xaf   :  { %766 = vmatprep.subr.bf16.mxu1 %v765_v35 }
  0xb2   :  { %768 = vmatpush1.bf16.msra.mxu1 %v767_v40 }
  0xb3   :  { %770 = vmatprep.subr.bf16.mxu1 %v769_v41 }
  0xb6   :  { %772 = vmatpush1.bf16.msra.mxu1 %v771_v44 }
  0xb9   :  { %415 = vmatmul.mubr.f32.vlgmr.msra.gmra.mrb[0].mxu1 %v54_v45 }
 0x15d   :  { %v558_v46 = vpop.f32.mrb[0].mxu0 }
 0x15e   :  { %v560_v47 = vpop.f32.mrb[1].mxu0 }
 0x18c   :  { %v416_v57 = vpop.f32.mrb[0].mxu1 }
 0x18d   :  { %v841_v58 = vadd.f32 %v416_v57, %v270_v55  ;;  %v418_v59 = vpop.f32.mrb[1].mxu1 }
 0x18e   :  { %v843_v60 = vadd.f32 %v418_v59, %v274_v56 }
 0x18f   :  { %v842_v61 = vadd.f32 %v841_v58, %v558_v46 }
 0x190   :  { %v844_v62 = vadd.f32 %v843_v60, %v560_v47 }
 0x192   :  { %v563_v63 = vadd.f32 %v844_v62, %v842_v61 }
 0x194   :  { %564 = vadd.xlane.f32.xlu0 %v563_v63 }
 0x221   :  { %v565_v2 = vpop.xlane.xlu0 %564 }
 0x222   :  { %v566_v3 = vmul.f32 0.004, %v565_v2 }
 0x224   :  { %v567_v4 = vsub.f32 %v842_v61, %v566_v3  ;;  %v568_v5 = vsub.f32 %v844_v62, %v566_v3 }
 0x226   :  { %v575_v6 = vsel %vm573_vm1, %v568_v5, 0.0  ;;  %v576_v7 = vmul.f32 %v567_v4, %v567_v4 }
 0x227   :  { %v577_v8 = vmul.f32 %v575_v6, %v575_v6 }
 0x229   :  { %v578_v9 = vadd.f32 %v577_v8, %v576_v7 }
 0x22b   :  { %579 = vadd.xlane.f32.xlu0 %v578_v9 }
 0x2b8   :  { %v580_v10 = vpop.xlane.xlu0 %579 }
 0x2b9   :  { %v581_v11 = vmul.f32 0.004, %v580_v10 }
 0x2bb   :  { %v582_v12 = vadd.f32 1e-05, %v581_v11 }
 0x2bd   :  { %856 = vrsqrt.f32 %v582_v12 }
 0x2c7   :  { %v857_v23 = vpop.eup %856 }
 0x2c8   :  { %v602_v24 = vmul.f32 %v857_v23, %v597_v19  ;;  %v603_v25 = vmul.f32 %v857_v23, %v601_v20 }
 0x2ca   :  { %v604_v28 = vmul.f32 %v602_v24, %v567_v4  ;;  %v605_v29 = vmul.f32 %v603_v25, %v575_v6 }
 0x2cc   :  { %v624_v30 = vadd.f32 %v619_v26, %v604_v28  ;;  %v625_v31 = vadd.f32 %v623_v27, %v605_v29 }
 0x2ce   :  { %626 = vst [vmem:[#allocation8] sm:$0xff] %v624_v30  ;;  %627 = vst [vmem:[#allocation8 + $0x8] sm:$0xff] %v625_v31 }
 0x2cf   :  { %935 = shalt.err (!%p932_p0)
}
 0x2d0   :  { %s936_s25 = scalar_lea.hbm %s1030_s3, 256 }
 0x2d1   :  { %p937_p1 = scmp.ne.s32.totalorder %s1030_s3, %s936_s25  ;;  %p940_p2 = scmp.lt.u32.totalorder %s936_s25, %s1030_s3 }
 0x2d3   :  { %p942_p3 = pnand %p940_p2, %p937_p1 }
 0x2d5   :  { %945 = shalt.err (!%p942_p3)
}
 0x2d6   :  { %637 = dma.vmem_to_hbm [thread:$0]  %s635_s21, 256, %s1030_s3, [#allocation4]  }
 0x2d7   :  { %950 = dma.done.wait [#allocation4], 256  }
 0x2d8   :  { %951 = vsyncadd [#allocation4], 4294967040 }
 0x2d9   :  { %641 = vsyncpa [#allocation3], 1 }
 0x2da   :  { %642 = vsyncpa [#allocation6], 1 }
 0x2db   :  { %643 = vsyncpa [#allocation4], 1 }

</bundles_post_ra>
